<compile_context>
chip_gen: v6e
topology: v6e:2x2x1
jax: 0.10.0
libtpu: 0.0.40
codegen_flags: <defaults>
</compile_context>

<pallas_src>
import functools

import jax
import jax.numpy as jnp
from jax.experimental import pallas as pl
from jax.experimental.pallas import tpu as pltpu

HIDDEN_PAD = 128  # pad the 4-wide hidden layer to the MXU-native lane width


def _mlp_kernel(x_ref, w1_ref, b1_ref, w2_ref, b2_ref, o_ref):
    # Layer 1 on the MXU: (TILE_B, D_in) @ (D_in, HIDDEN_PAD), f32 accumulation.
    h = jnp.dot(x_ref[...], w1_ref[...], preferred_element_type=jnp.float32)
    h = jnp.maximum(h + b1_ref[...], 0.0)                       # (TILE_B, HIDDEN_PAD), f32
    # Layer 2 on the VPU: K=4, N=1 contraction as multiply + lane reduce.
    y = jnp.sum(h * w2_ref[...], axis=-1, keepdims=True) + b2_ref[...]
    # Sigmoid on the EUP; keep the activation path in f32.
    o_ref[...] = jax.nn.sigmoid(y).astype(o_ref.dtype)


@functools.partial(jax.jit, static_argnames=("tile_b", "matmul_dtype"))
def net_forward(x, w1, b1, w2, b2, *, tile_b=1024, matmul_dtype=None):
    """Forward pass of Net.

    PyTorch-native parameter layouts:
      x : (B, D_in) f32
      w1: (4, D_in)   b1: (4,)
      w2: (1, 4)      b2: (1,)
    Returns (B, 1) f32.
    """
    B, d_in = x.shape
    hidden = w1.shape[0]
    out_dim = w2.shape[0]
    assert hidden <= HIDDEN_PAD and out_dim == 1

    # ---- wrapper-side layout prep (O(weights), tiny) -----------------------
    # Pre-transpose to (in, out) and zero-pad the hidden dim so layer 1 runs a
    # non-degenerate, lane-aligned matmul. Padded columns contribute zeros.
    w1_p = jnp.zeros((d_in, HIDDEN_PAD), jnp.float32).at[:, :hidden].set(w1.T)
    b1_p = jnp.zeros((1, HIDDEN_PAD), jnp.float32).at[:, :hidden].set(b1[None, :])
    w2_p = jnp.zeros((1, HIDDEN_PAD), jnp.float32).at[:, :hidden].set(w2)
    b2_p = b2.reshape(1, 1).astype(jnp.float32)

    if matmul_dtype is not None:
        # Downcast only the layer-1 matmul inputs (accumulation stays f32).
        x = x.astype(matmul_dtype)
        w1_p = w1_p.astype(matmul_dtype)

    # ---- batch tiling ------------------------------------------------------
    tile_b = int(min(tile_b, B))
    if tile_b < B and tile_b % 8 != 0:          # keep the sublane dim aligned
        tile_b = max(8, (tile_b // 8) * 8)
    grid = (pl.cdiv(B, tile_b),)

    bytes_accessed = (
        B * d_in * x.dtype.itemsize                    # x
        + d_in * HIDDEN_PAD * w1_p.dtype.itemsize      # w1 (resident, read once)
        + 2 * HIDDEN_PAD * 4 + 4                       # b1, w2, b2
        + B * 1 * 4                                    # output
    )
    cost = pl.CostEstimate(
        flops=2 * B * d_in * hidden + 4 * B * hidden,
        transcendentals=B,                             # one exp per sigmoid
        bytes_accessed=int(bytes_accessed),
    )

    return pl.pallas_call(
        _mlp_kernel,
        out_shape=jax.ShapeDtypeStruct((B, 1), jnp.float32),
        grid=grid,
        in_specs=[
            pl.BlockSpec((tile_b, d_in), lambda i: (i, 0)),       # x tile
            pl.BlockSpec((d_in, HIDDEN_PAD), lambda i: (0, 0)),   # w1 (resident)
            pl.BlockSpec((1, HIDDEN_PAD), lambda i: (0, 0)),      # b1 (resident)
            pl.BlockSpec((1, HIDDEN_PAD), lambda i: (0, 0)),      # w2 (resident)
            pl.BlockSpec((1, 1), lambda i: (0, 0)),               # b2 (resident)
        ],
        out_specs=pl.BlockSpec((tile_b, 1), lambda i: (i, 0)),
        compiler_params=pltpu.CompilerParams(
            dimension_semantics=("parallel",),
        ),
        cost_estimate=cost,
    )(x, w1_p, b1_p, w2_p, b2_p)


if __name__ == "__main__":
    key = jax.random.PRNGKey(0)
    kx, k1, k2, k3, k4, kx2 = jax.random.split(key, 6)

    D_in, hidden, out_dim = 32, 4, 1
    bound1 = 1.0 / jnp.sqrt(D_in)
    bound2 = 1.0 / jnp.sqrt(hidden)
    # PyTorch-native parameter layouts / init ranges.
    w1 = jax.random.uniform(k1, (hidden, D_in), jnp.float32, -bound1, bound1)
    b1 = jax.random.uniform(k2, (hidden,), jnp.float32, -bound1, bound1)
    w2 = jax.random.uniform(k3, (out_dim, hidden), jnp.float32, -bound2, bound2)
    b2 = jax.random.uniform(k4, (out_dim,), jnp.float32, -bound2, bound2)

    def ref(x):
        return jax.nn.sigmoid(jnp.maximum(x @ w1.T + b1, 0.0) @ w2.T + b2)

    # 1) Small single-tile case (the module's toy size).
    x_small = jax.random.normal(kx, (8, D_in), jnp.float32)
    y_small = jax.block_until_ready(net_forward(x_small, w1, b1, w2, b2))
    assert y_small.shape == (8, 1)
    assert jnp.allclose(y_small, ref(x_small), atol=1e-5, rtol=1e-5)

    # 2) Multi-tile case exercising the pipelined batch grid (4 grid steps).
    x_big = jax.random.normal(kx2, (2048, D_in), jnp.float32)
    y_big = jax.block_until_ready(net_forward(x_big, w1, b1, w2, b2, tile_b=512))
    assert y_big.shape == (2048, 1)
    assert jnp.allclose(y_big, ref(x_big), atol=1e-5, rtol=1e-5)

    # 3) Optional bf16 layer-1 matmul path (f32 accumulation + f32 activations).
    y_bf16 = jax.block_until_ready(
        net_forward(x_big, w1, b1, w2, b2, tile_b=512, matmul_dtype=jnp.bfloat16)
    )
    assert jnp.allclose(y_bf16, ref(x_big), atol=2e-2)

    print("KERNEL_OK")
</pallas_src>

<mosaic_0001>
module attributes {stable_mosaic.version = 11 : i64} {
  func.func @_mlp_kernel(%arg0: i32, %arg1: memref<8x32xf32, #tpu.memory_space<vmem>>, %arg2: memref<32x128xf32, #tpu.memory_space<vmem>>, %arg3: memref<1x128xf32, #tpu.memory_space<vmem>>, %arg4: memref<1x128xf32, #tpu.memory_space<vmem>>, %arg5: memref<1x1xf32, #tpu.memory_space<vmem>>, %arg6: memref<8x1xf32, #tpu.memory_space<vmem>>) attributes {dimension_semantics = [#tpu.dimension_semantics<parallel>], iteration_bounds = array<i64: 1>, scalar_prefetch = 0 : i64, scratch_operands = 0 : i64, tpu.core_type = #tpu.core_type<tc>, window_params = [{transform_indices = @transform_0, window_bounds = array<i64: 8, 32>}, {pipeline_mode = #tpu.pipeline_mode<synchronous>, transform_indices = @transform_1, window_bounds = array<i64: 32, 128>}, {pipeline_mode = #tpu.pipeline_mode<synchronous>, transform_indices = @transform_2, window_bounds = array<i64: 1, 128>}, {pipeline_mode = #tpu.pipeline_mode<synchronous>, transform_indices = @transform_3, window_bounds = array<i64: 1, 128>}, {pipeline_mode = #tpu.pipeline_mode<synchronous>, transform_indices = @transform_4, window_bounds = array<i64: 1, 1>}, {transform_indices = @transform_5, window_bounds = array<i64: 8, 1>}]} {
    %c0 = arith.constant 0 : index
    %c0_0 = arith.constant 0 : index
    %0 = vector.load %arg1[%c0, %c0_0] : memref<8x32xf32, #tpu.memory_space<vmem>>, vector<8x32xf32>
    %c0_1 = arith.constant 0 : index
    %c0_2 = arith.constant 0 : index
    %1 = vector.load %arg2[%c0_1, %c0_2] : memref<32x128xf32, #tpu.memory_space<vmem>>, vector<32x128xf32>
    %cst = arith.constant dense<0.000000e+00> : vector<8x128xf32>
    %2 = tpu.matmul %0, %1, %cst {dimension_numbers = #tpu.dot_dimension_numbers<[1], [0], [0], [1], [0, 0, 1, 1], [], []>} : vector<8x32xf32>, vector<32x128xf32>, vector<8x128xf32> -> vector<8x128xf32>
    %c0_3 = arith.constant 0 : index
    %c0_4 = arith.constant 0 : index
    %3 = vector.load %arg3[%c0_3, %c0_4] : memref<1x128xf32, #tpu.memory_space<vmem>>, vector<1x128xf32>
    %4 = vector.broadcast %3 : vector<1x128xf32> to vector<8x128xf32>
    %5 = arith.addf %2, %4 : vector<8x128xf32>
    %cst_5 = arith.constant 0.000000e+00 : f32
    %6 = vector.broadcast %cst_5 : f32 to vector<8x128xf32>
    %7 = arith.maximumf %5, %6 : vector<8x128xf32>
    %c0_6 = arith.constant 0 : index
    %c0_7 = arith.constant 0 : index
    %8 = vector.load %arg4[%c0_6, %c0_7] : memref<1x128xf32, #tpu.memory_space<vmem>>, vector<1x128xf32>
    %9 = vector.broadcast %8 : vector<1x128xf32> to vector<8x128xf32>
    %10 = arith.mulf %7, %9 : vector<8x128xf32>
    %cst_8 = arith.constant dense<0.000000e+00> : vector<8xf32>
    %11 = vector.multi_reduction <add>, %10, %cst_8 [1] : vector<8x128xf32> to vector<8xf32>
    %12 = vector.shape_cast %11 : vector<8xf32> to vector<8x1xf32>
    %c0_9 = arith.constant 0 : index
    %c0_10 = arith.constant 0 : index
    %13 = vector.load %arg5[%c0_9, %c0_10] : memref<1x1xf32, #tpu.memory_space<vmem>>, vector<1x1xf32>
    %14 = vector.broadcast %13 : vector<1x1xf32> to vector<8x1xf32>
    %15 = arith.addf %12, %14 : vector<8x1xf32>
    %16 = arith.negf %15 : vector<8x1xf32>
    %17 = math.exp %16 : vector<8x1xf32>
    %cst_11 = arith.constant 1.000000e+00 : f32
    %18 = vector.broadcast %cst_11 : f32 to vector<8x1xf32>
    %19 = arith.addf %18, %17 : vector<8x1xf32>
    %20 = arith.divf %18, %19 : vector<8x1xf32>
    %c0_12 = arith.constant 0 : index
    %c0_13 = arith.constant 0 : index
    %21 = vector.load %arg6[%c0_12, %c0_13] : memref<8x1xf32, #tpu.memory_space<vmem>>, vector<8x1xf32>
    tpu.vector_store %arg6[%c0_12, %c0_13], %20 {strides = array<i32>} : memref<8x1xf32, #tpu.memory_space<vmem>>, vector<8x1xf32>,
    return
  }
  func.func @transform_0(%arg0: i32) -> (i32, i32) {
    %c0_i32 = arith.constant 0 : i32
    %c0_i32_0 = arith.constant 0 : i32
    return %arg0, %c0_i32 : i32, i32
  }
  func.func @transform_1(%arg0: i32) -> (i32, i32) {
    %c0_i32 = arith.constant 0 : i32
    %c0_i32_0 = arith.constant 0 : i32
    %c0_i32_1 = arith.constant 0 : i32
    return %c0_i32, %c0_i32_0 : i32, i32
  }
  func.func @transform_2(%arg0: i32) -> (i32, i32) {
    %c0_i32 = arith.constant 0 : i32
    %c0_i32_0 = arith.constant 0 : i32
    %c0_i32_1 = arith.constant 0 : i32
    return %c0_i32, %c0_i32_0 : i32, i32
  }
  func.func @transform_3(%arg0: i32) -> (i32, i32) {
    %c0_i32 = arith.constant 0 : i32
    %c0_i32_0 = arith.constant 0 : i32
    %c0_i32_1 = arith.constant 0 : i32
    return %c0_i32, %c0_i32_0 : i32, i32
  }
  func.func @transform_4(%arg0: i32) -> (i32, i32) {
    %c0_i32 = arith.constant 0 : i32
    %c0_i32_0 = arith.constant 0 : i32
    %c0_i32_1 = arith.constant 0 : i32
    return %c0_i32, %c0_i32_0 : i32, i32
  }
  func.func @transform_5(%arg0: i32) -> (i32, i32) {
    %c0_i32 = arith.constant 0 : i32
    %c0_i32_0 = arith.constant 0 : i32
    return %arg0, %c0_i32 : i32, i32
  }
}

</mosaic_0001>

<bundles_post_ra>
// kernel: net_forward.1
= control target key start
LH: loop header
LB: loop body
LE: loop exit
PB: predicated region body
PF: predicated region fallthrough
CT: control target
= control target key end

     0   :  { %v166_v0 = vmov 0.0   ;;  %vm167_vm0 = vmmov 0   ;;  %vm34_vm1 = vcmask 261120   ;;  %vm133_vm2 = vcmask 7168   ;;  %s225_s1 = inlined_call_operand.vmem [shape: f32[32,128], index: 1, kind: input, shape index: {}]   ;;  %s226_s0 = inlined_call_operand.vmem [shape: f32[8,32], index: 0, kind: input, shape index: {}]   ;;  %s227_s4 = inlined_call_operand.<no memory space> [shape: f32[1,1], index: 4, kind: input, shape index: {}]   ;;  %s228_s2 = inlined_call_operand.vmem [shape: f32[1,128], index: 2, kind: input, shape index: {}]   ;;  %s229_s3 = inlined_call_operand.vmem [shape: f32[1,128], index: 3, kind: input, shape index: {}]   ;;  %s230_s5 = inlined_call_operand.vmem [shape: f32[8,1], index: 5, kind: output, shape index: {}]  }
   0x1   :  { %149 = vmatprep.subr.mxu0 %v166_v0  ;;  %v26_v1 = vld [vmem:[%s225_s1 + $0x18] sm:$0xff]  ;;  %v25_v2 = vld [vmem:[%s225_s1 + $0x10] sm:$0xff]  ;;  %157 = vmatprep.mubr.msk.f32.mxu0 %vm167_vm0, %v166_v0  ;;  %v24_v3 = vld [vmem:[%s225_s1 + $0x8] sm:$0xff]  ;;  %v10_v6 = vstv %s227_s4 }
   0x2   :  { %150 = vmatpush3.msra.mxu0 %v26_v1  ;;  %v23_v4 = vld [vmem:[%s225_s1] sm:$0xff]  ;;  %11 = vst [vmem:[#allocation2] sm:$0x1] %v10_v6 }
   0x3   :  { %151 = vmatprep.subr.mxu0 %v166_v0  ;;  %v22_v5 = vld [vmem:[%s226_s0] sm:$0xff] }
   0x4   :  { %152 = vmatpush3.msra.mxu0 %v25_v2  ;;  %v139_v7 = vld [vmem:[%s228_s2] ss:$0 sm:$0xff] }
   0x5   :  { %153 = vmatprep.subr.mxu0 %v166_v0  ;;  %v141_v11 = vld [vmem:[%s229_s3] ss:$0 sm:$0xff] }
   0x6   :  { %154 = vmatpush3.msra.mxu0 %v24_v3 }
   0x7   :  { %155 = vmatprep.subr.mxu0 %v166_v0 }
   0x8   :  { %156 = vmatpush3.msra.mxu0 %v23_v4 }
   0x9   :  { %158 = vmatmul.mubr.msk.f32.vlgmr.msra.gmra.mxu0 %vm34_vm1, %v22_v5  ;;  %v142_v14 = vld [vmem:[#allocation2] ss:$0 sm:$0xff] }
  0xc9   :  { %v104_v8 = vpop.f32.mrf.mxu0 }
  0xca   :  { %v105_v9 = vadd.f32 %v139_v7, %v104_v8 }
  0xcb   :  { %v159_v10 = vpop.f32.mrf.mxu0 }
  0xcc   :  { %v108_v12 = vmax.f32 %v105_v9, 0.0 }
  0xce   :  { %v116_v13 = vmul.f32 %v141_v11, %v108_v12 }
  0xd0   :  { %117 = vadd.xlane.f32.xlu0 %v116_v13 }
 0x159   :  { %v118_v15 = vpop.xlane.xlu0 %117 }
 0x15a   :  { %v126_v16 = vadd.f32 %v142_v14, %v118_v15 }
 0x15c   :  { %v143_v17 = vmul.f32 -1.442695, %v126_v16 }
 0x15e   :  { %162 = vpow2.f32 %v143_v17 }
 0x16b   :  { %v163_v18 = vpop.eup %162 }
 0x16c   :  { %v130_v19 = vadd.f32 1.0, %v163_v18 }
 0x16e   :  { %164 = vrcp.f32 %v130_v19 }
 0x17b   :  { %v165_v20 = vpop.eup %164 }
 0x17c   :  { %134 = vst.msk [vmem:[%s230_s5] sm:$0xff] %vm133_vm2, %v165_v20 }

</bundles_post_ra>
